<compile_context>
chip_gen: v5e
topology: v5e:2x2
jax: 0.10.0
libtpu: 0.0.40
codegen_flags: <defaults>
</compile_context>

<pallas_src>
import functools

import jax
import jax.numpy as jnp
from jax.experimental import pallas as pl
from jax.experimental.pallas import tpu as pltpu


# ---------------------------------------------------------------------------
# Plain-JAX glue (window split / merge), mirroring the PyTorch helpers.
# ---------------------------------------------------------------------------
def split_feature_channel_last(x, num_splits):
    # (B, H, W, C) -> (B*ns*ns, H/ns, W/ns, C)
    if num_splits == 1:
        return x
    b, h, w, c = x.shape
    hh, ww = h // num_splits, w // num_splits
    x = x.reshape(b, num_splits, hh, num_splits, ww, c)
    x = jnp.transpose(x, (0, 1, 3, 2, 4, 5))
    return x.reshape(b * num_splits * num_splits, hh, ww, c)


def merge_splits_channel_last(x, num_splits):
    # (B*ns*ns, h, w, C) -> (B, ns*h, ns*w, C)
    if num_splits == 1:
        return x
    b, h, w, c = x.shape
    new_b = b // (num_splits * num_splits)
    x = x.reshape(new_b, num_splits, num_splits, h, w, c)
    x = jnp.transpose(x, (0, 1, 3, 2, 4, 5))
    return x.reshape(new_b, num_splits * h, num_splits * w, c)


# ---------------------------------------------------------------------------
# Pallas kernels: TB windows of attention per grid step.
# ---------------------------------------------------------------------------
def _softmax_unnormalized(s):
    # Stable softmax numerator + reciprocal of the denominator (f32 math).
    # Normalization is deferred to the caller (applied to the (tb,L,C) output
    # instead of the (tb,L,L) probabilities -> fewer VALU ops when L > C).
    s = s - jnp.max(s, axis=-1, keepdims=True)
    p = jnp.exp(s)
    denom = jnp.sum(p, axis=-1, keepdims=True)
    r = pl.reciprocal(denom, approx=True)        # EUP slot (otherwise idle)
    r = r * (2.0 - denom * r)                    # one Newton step -> ~f32 accuracy
    return p, r


def _attn_kernel_masked(q_ref, k_ref, v_ref, m_ref, o_ref, *, inv_scale):
    # q/k/v: (TB, L, C); m: (NW, L, L) f32 (resident, constant index_map);
    # o: (TB, L, C).  Window index within the block is j % NW (TB % NW == 0).
    q = q_ref[...] * inv_scale                   # fold 1/sqrt(C) into (TB,L,C) operand
    k = k_ref[...]
    v = v_ref[...]
    # Batched q @ k^T without an explicit transpose: contract the C dims.
    s = jax.lax.dot_general(q, k, (((2,), (2,)), ((0,), (0,))),
                            preferred_element_type=jnp.float32)
    nw, L, _ = m_ref.shape
    tb = s.shape[0]
    m = m_ref[...]
    if nw == 1:
        s = s + m                                # (1,L,L) broadcasts over TB
    else:
        # Leading-dim split + broadcast add; the tiled minor dims (L, L) are
        # untouched, so this is layout-free.
        s = (s.reshape(tb // nw, nw, L, L) + m[None]).reshape(tb, L, L)
    p, r = _softmax_unnormalized(s)
    o = jax.lax.dot_general(p.astype(v.dtype), v, (((2,), (1,)), ((0,), (0,))),
                            preferred_element_type=jnp.float32)
    o_ref[...] = (o * r).astype(o_ref.dtype)     # deferred normalization


def _attn_kernel_nomask(q_ref, k_ref, v_ref, o_ref, *, inv_scale):
    q = q_ref[...] * inv_scale
    k = k_ref[...]
    v = v_ref[...]
    s = jax.lax.dot_general(q, k, (((2,), (2,)), ((0,), (0,))),
                            preferred_element_type=jnp.float32)
    p, r = _softmax_unnormalized(s)
    o = jax.lax.dot_general(p.astype(v.dtype), v, (((2,), (1,)), ((0,), (0,))),
                            preferred_element_type=jnp.float32)
    o_ref[...] = (o * r).astype(o_ref.dtype)


# ---------------------------------------------------------------------------
# Sizing helpers.
# ---------------------------------------------------------------------------
def _round_up(x, m):
    return ((x + m - 1) // m) * m


def _vmem_budget_bytes():
    """(sizing budget, compiler vmem limit) derived from physical VMEM."""
    try:
        cap = int(pltpu.get_tpu_info().vmem_capacity_bytes)
    except Exception:                       # conservative fallback (v7x per-core)
        cap = 64 * 1024 * 1024
    # Size the window batch against ~70% of physical VMEM; let the compiler
    # use up to ~85% (headroom for Mosaic internal scratch / layout padding).
    return int(cap * 0.70), int(cap * 0.85)


def _choose_window_batch(b_groups, nw, L, c, itemsize, max_windows_per_step,
                         vmem_budget, masked):
    """Windows per grid step = nw * d with d a divisor of b_groups.

    VMEM model (per review): last dims pad to 128 lanes, q/k/v/out are
    double-buffered, the f32 score/prob intermediates are live, and the mask
    is a fixed (nw, L, L) resident cost (2 buffers), not a per-window one.
    """
    L_sub = _round_up(L, 16)                 # sublane pad (covers bf16 packing)
    c_lane = _round_up(c, 128)               # lane pad of the channel dim
    L_lane = _round_up(L, 128)               # lane pad of the key dim
    per_window = (4 * 2 * L_sub * c_lane * itemsize     # q, k, v, out (x2 buffers)
                  + 3 * L_sub * L_lane * 4)              # s, p + exp/max temps (f32)
    fixed = (2 * nw * L_sub * L_lane * 4) if masked else 0
    budget_windows = max(1, (vmem_budget - fixed) // per_window)
    cap = min(budget_windows, max_windows_per_step)

    # tb must be nw * d with d | b_groups: no q/k/v padding copies and the
    # mask index within a block is step-invariant (j % nw).
    feasible = [d for d in range(1, b_groups + 1)
                if b_groups % d == 0 and nw * d <= cap]
    if not feasible:
        # Minimum tile that keeps the mask step-invariant; at realistic window
        # sizes nw windows are tiny, so this cannot meaningfully exceed VMEM.
        feasible = [1]
    # Prefer >= 2 grid steps so the "parallel" axis can be sharded across
    # v7x's two TensorCores; one extra step costs ~0.35 us on 1-core chips.
    multi_step = [d for d in feasible if b_groups // d >= 2]
    d = max(multi_step) if multi_step else max(feasible)
    return nw * d


# ---------------------------------------------------------------------------
# Pallas dispatch.
# ---------------------------------------------------------------------------
def _windowed_attention(qw, kw, vw, mask, scale, *, max_windows_per_step=256):
    # qw/kw/vw: (BW, L, C); mask: (NW, L, L) or None (window index = bw % NW).
    bw, L, c = qw.shape
    out_dtype = qw.dtype
    nw = 1 if mask is None else mask.shape[0]
    assert bw % nw == 0, "window count must be a multiple of the mask count"
    b_groups = bw // nw
    itemsize = jnp.dtype(out_dtype).itemsize

    vmem_budget, vmem_limit = _vmem_budget_bytes()
    tb = _choose_window_batch(b_groups, nw, L, c, itemsize,
                              max_windows_per_step, vmem_budget,
                              masked=mask is not None)

    grid = (bw // tb,)                       # exact cover: no padding copies
    qkv_spec = pl.BlockSpec((tb, L, c), lambda g: (g, 0, 0))
    out_spec = pl.BlockSpec((tb, L, c), lambda g: (g, 0, 0))
    inv_scale = float(1.0 / scale)

    if mask is None:
        kernel = functools.partial(_attn_kernel_nomask, inv_scale=inv_scale)
        in_specs = [qkv_spec, qkv_spec, qkv_spec]
        operands = (qw, kw, vw)
    else:
        # Mask stays (nw, L, L): constant index_map keeps it VMEM-resident
        # across all grid steps with no redundant HBM copies.
        kernel = functools.partial(_attn_kernel_masked, inv_scale=inv_scale)
        in_specs = [qkv_spec, qkv_spec, qkv_spec,
                    pl.BlockSpec((nw, L, L), lambda g: (0, 0, 0))]
        operands = (qw, kw, vw, mask.astype(jnp.float32))

    return pl.pallas_call(
        kernel,
        out_shape=jax.ShapeDtypeStruct((bw, L, c), out_dtype),
        grid_spec=pltpu.PrefetchScalarGridSpec(
            num_scalar_prefetch=0,
            grid=grid,
            in_specs=in_specs,
            out_specs=out_spec,
        ),
        compiler_params=pltpu.CompilerParams(
            dimension_semantics=("parallel",),   # independent windows -> megacore
            vmem_limit_bytes=vmem_limit,
        ),
    )(*operands)


# ---------------------------------------------------------------------------
# Module-equivalent wrapper (forward pass of ShiftedWindowAttention).
# ---------------------------------------------------------------------------
def shifted_window_attention(q, k, v, *, num_splits=1, with_shift=False,
                             h=None, w=None, attn_mask=None,
                             max_windows_per_step=256, io_dtype=None):
    assert q.ndim == k.ndim == v.ndim == 3
    assert h is not None and w is not None
    assert q.shape[1] == h * w
    b, _, c = q.shape
    out_dtype = q.dtype
    wsh = h // num_splits
    wsw = w // num_splits
    L = wsh * wsw
    bw = b * num_splits * num_splits
    scale_factor = float(c) ** 0.5

    q4 = q.reshape(b, h, w, c)
    k4 = k.reshape(b, h, w, c)
    v4 = v.reshape(b, h, w, c)

    if with_shift:
        assert attn_mask is not None
        sh, sw = wsh // 2, wsw // 2
        # TODO(synk): the cyclic shift wraps window contents around the image
        # border, so it cannot be expressed as a rectangular BlockSpec tile;
        # it stays a (cheap) XLA roll.
        q4 = jnp.roll(q4, shift=(-sh, -sw), axis=(1, 2))
        k4 = jnp.roll(k4, shift=(-sh, -sw), axis=(1, 2))
        v4 = jnp.roll(v4, shift=(-sh, -sw), axis=(1, 2))
        mask = attn_mask
    else:
        mask = None   # no-shift path: no mask stream, no dead VPU add

    qw = split_feature_channel_last(q4, num_splits).reshape(bw, L, c)
    kw = split_feature_channel_last(k4, num_splits).reshape(bw, L, c)
    vw = split_feature_channel_last(v4, num_splits).reshape(bw, L, c)

    if io_dtype is not None:
        # Optional narrow HBM carrier (e.g. bfloat16) for this bandwidth-bound
        # kernel; accumulation and softmax math stay f32 inside the kernel.
        qw = qw.astype(io_dtype)
        kw = kw.astype(io_dtype)
        vw = vw.astype(io_dtype)

    out = _windowed_attention(qw, kw, vw, mask, scale_factor,
                              max_windows_per_step=max_windows_per_step)
    out = out.astype(out_dtype)

    out = merge_splits_channel_last(out.reshape(bw, wsh, wsw, c), num_splits)
    if with_shift:
        out = jnp.roll(out, shift=(sh, sw), axis=(1, 2))
    return out.reshape(b, h * w, c)


# ---------------------------------------------------------------------------
# Pure-JAX reference (mirrors the PyTorch forward exactly) for validation.
# ---------------------------------------------------------------------------
def _reference(q, k, v, *, num_splits, with_shift, h, w, attn_mask):
    b, _, c = q.shape
    b_new = b * num_splits * num_splits
    wsh, wsw = h // num_splits, w // num_splits
    scale = float(c) ** 0.5
    q = q.reshape(b, h, w, c)
    k = k.reshape(b, h, w, c)
    v = v.reshape(b, h, w, c)
    if with_shift:
        sh, sw = wsh // 2, wsw // 2
        q = jnp.roll(q, shift=(-sh, -sw), axis=(1, 2))
        k = jnp.roll(k, shift=(-sh, -sw), axis=(1, 2))
        v = jnp.roll(v, shift=(-sh, -sw), axis=(1, 2))
    qw = split_feature_channel_last(q, num_splits).reshape(b_new, -1, c)
    kw = split_feature_channel_last(k, num_splits).reshape(b_new, -1, c)
    vw = split_feature_channel_last(v, num_splits).reshape(b_new, -1, c)
    scores = jnp.einsum("blc,bmc->blm", qw, kw) / scale
    if with_shift:
        scores = scores + jnp.tile(attn_mask, (b, 1, 1))
    attn = jax.nn.softmax(scores, axis=-1)
    out = jnp.einsum("blm,bmc->blc", attn, vw)
    out = merge_splits_channel_last(out.reshape(b_new, wsh, wsw, c), num_splits)
    if with_shift:
        out = jnp.roll(out, shift=(sh, sw), axis=(1, 2))
    return out.reshape(b, -1, c)


if __name__ == "__main__":
    # ShiftedWindowAttention has no learnable parameters; config only.
    num_splits = 2
    b, h, w, c = 2, 8, 8, 32
    wsh, wsw = h // num_splits, w // num_splits
    L = wsh * wsw

    key = jax.random.PRNGKey(0)
    kq, kk, kv, km = jax.random.split(key, 4)
    q = jax.random.normal(kq, (b, h * w, c), jnp.float32)
    k = jax.random.normal(kk, (b, h * w, c), jnp.float32)
    v = jax.random.normal(kv, (b, h * w, c), jnp.float32)
    # Deterministic synthetic shift attention mask: (ns*ns, L, L)
    attn_mask = jax.random.normal(km, (num_splits * num_splits, L, L), jnp.float32)

    tol = dict(atol=1e-3, rtol=1e-3)  # approx-reciprocal + Newton step in kernel

    # 1) shift path (resident (nw,L,L) mask, multi-step grid)
    out = shifted_window_attention(
        q, k, v, num_splits=num_splits, with_shift=True,
        h=h, w=w, attn_mask=attn_mask)
    out = jax.block_until_ready(out)
    ref = _reference(q, k, v, num_splits=num_splits, with_shift=True,
                     h=h, w=w, attn_mask=attn_mask)
    assert out.shape == (b, h * w, c)
    assert jnp.allclose(out, ref, **tol), "mismatch vs reference (shift)"

    # 2) no-shift path (mask-free kernel variant)
    out2 = shifted_window_attention(q, k, v, num_splits=num_splits,
                                    with_shift=False, h=h, w=w)
    out2 = jax.block_until_ready(out2)
    ref2 = _reference(q, k, v, num_splits=num_splits, with_shift=False,
                      h=h, w=w, attn_mask=None)
    assert jnp.allclose(out2, ref2, **tol), "mismatch vs reference (no shift)"

    # 3) odd batch + capped window batch -> 3 grid steps, mask reused across steps
    b3 = 3
    kq3, kk3, kv3 = jax.random.split(jax.random.PRNGKey(1), 3)
    q3 = jax.random.normal(kq3, (b3, h * w, c), jnp.float32)
    k3 = jax.random.normal(kk3, (b3, h * w, c), jnp.float32)
    v3 = jax.random.normal(kv3, (b3, h * w, c), jnp.float32)
    out3 = shifted_window_attention(
        q3, k3, v3, num_splits=num_splits, with_shift=True,
        h=h, w=w, attn_mask=attn_mask, max_windows_per_step=8)
    out3 = jax.block_until_ready(out3)
    ref3 = _reference(q3, k3, v3, num_splits=num_splits, with_shift=True,
                      h=h, w=w, attn_mask=attn_mask)
    assert jnp.allclose(out3, ref3, **tol), "mismatch vs reference (multi-step)"

    # 4) bfloat16 HBM carrier (halves HBM traffic; f32 accumulation/softmax)
    out4 = shifted_window_attention(
        q, k, v, num_splits=num_splits, with_shift=True,
        h=h, w=w, attn_mask=attn_mask, io_dtype=jnp.bfloat16)
    out4 = jax.block_until_ready(out4)
    assert out4.dtype == jnp.float32
    assert jnp.allclose(out4, ref, atol=5e-2, rtol=5e-2), \
        "mismatch vs reference (bf16 I/O)"

    print("KERNEL_OK")
</pallas_src>

<mosaic_0001>
module attributes {stable_mosaic.version = 11 : i64} {
  func.func @_attn_kernel_masked(%arg0: i32, %arg1: memref<4x16x32xf32, #tpu.memory_space<vmem>>, %arg2: memref<4x16x32xf32, #tpu.memory_space<vmem>>, %arg3: memref<4x16x32xf32, #tpu.memory_space<vmem>>, %arg4: memref<4x16x16xf32, #tpu.memory_space<vmem>>, %arg5: memref<4x16x32xf32, #tpu.memory_space<vmem>>) attributes {dimension_semantics = [#tpu.dimension_semantics<parallel>], iteration_bounds = array<i64: 2>, scalar_prefetch = 0 : i64, scratch_operands = 0 : i64, tpu.core_type = #tpu.core_type<tc>, window_params = [{transform_indices = @transform_0, window_bounds = array<i64: 4, 16, 32>}, {transform_indices = @transform_1, window_bounds = array<i64: 4, 16, 32>}, {transform_indices = @transform_2, window_bounds = array<i64: 4, 16, 32>}, {pipeline_mode = #tpu.pipeline_mode<synchronous>, transform_indices = @transform_3, window_bounds = array<i64: 4, 16, 16>}, {transform_indices = @transform_4, window_bounds = array<i64: 4, 16, 32>}]} {
    %c0 = arith.constant 0 : index
    %c0_0 = arith.constant 0 : index
    %c0_1 = arith.constant 0 : index
    %0 = vector.load %arg1[%c0, %c0_0, %c0_1] : memref<4x16x32xf32, #tpu.memory_space<vmem>>, vector<4x16x32xf32>
    %cst = arith.constant 0.176776692 : f32
    %1 = vector.broadcast %cst : f32 to vector<4x16x32xf32>
    %2 = arith.mulf %0, %1 : vector<4x16x32xf32>
    %c0_2 = arith.constant 0 : index
    %c0_3 = arith.constant 0 : index
    %c0_4 = arith.constant 0 : index
    %3 = vector.load %arg2[%c0_2, %c0_3, %c0_4] : memref<4x16x32xf32, #tpu.memory_space<vmem>>, vector<4x16x32xf32>
    %c0_5 = arith.constant 0 : index
    %c0_6 = arith.constant 0 : index
    %c0_7 = arith.constant 0 : index
    %4 = vector.load %arg3[%c0_5, %c0_6, %c0_7] : memref<4x16x32xf32, #tpu.memory_space<vmem>>, vector<4x16x32xf32>
    %cst_8 = arith.constant dense<0.000000e+00> : vector<4x16x16xf32>
    %5 = tpu.matmul %2, %3, %cst_8 {dimension_numbers = #tpu.dot_dimension_numbers<[2], [2], [1], [1], [0, 0, 0, 1, 1, 1], [0], [0]>} : vector<4x16x32xf32>, vector<4x16x32xf32>, vector<4x16x16xf32> -> vector<4x16x16xf32>
    %c0_9 = arith.constant 0 : index
    %c0_10 = arith.constant 0 : index
    %c0_11 = arith.constant 0 : index
    %6 = vector.load %arg4[%c0_9, %c0_10, %c0_11] : memref<4x16x16xf32, #tpu.memory_space<vmem>>, vector<4x16x16xf32>
    %7 = vector.shape_cast %5 : vector<4x16x16xf32> to vector<1x4x16x16xf32>
    %8 = vector.shape_cast %6 : vector<4x16x16xf32> to vector<1x4x16x16xf32>
    %9 = arith.addf %7, %8 : vector<1x4x16x16xf32>
    %10 = vector.shape_cast %9 : vector<1x4x16x16xf32> to vector<4x16x16xf32>
    %cst_12 = arith.constant dense<0xFF800000> : vector<4x16xf32>
    %11 = vector.multi_reduction <maximumf>, %10, %cst_12 [2] : vector<4x16x16xf32> to vector<4x16xf32>
    %12 = vector.shape_cast %11 : vector<4x16xf32> to vector<4x16x1xf32>
    %13 = vector.broadcast %12 : vector<4x16x1xf32> to vector<4x16x16xf32>
    %14 = arith.subf %10, %13 : vector<4x16x16xf32>
    %15 = math.exp %14 : vector<4x16x16xf32>
    %cst_13 = arith.constant dense<0.000000e+00> : vector<4x16xf32>
    %16 = vector.multi_reduction <add>, %15, %cst_13 [2] : vector<4x16x16xf32> to vector<4x16xf32>
    %17 = vector.shape_cast %16 : vector<4x16xf32> to vector<4x16x1xf32>
    %18 = tpu.reciprocal %17 {approx = true} : vector<4x16x1xf32> -> vector<4x16x1xf32>
    %19 = arith.mulf %17, %18 : vector<4x16x1xf32>
    %cst_14 = arith.constant 2.000000e+00 : f32
    %20 = vector.broadcast %cst_14 : f32 to vector<4x16x1xf32>
    %21 = arith.subf %20, %19 : vector<4x16x1xf32>
    %22 = arith.mulf %18, %21 : vector<4x16x1xf32>
    %cst_15 = arith.constant dense<0.000000e+00> : vector<4x16x32xf32>
    %23 = tpu.matmul %15, %4, %cst_15 {dimension_numbers = #tpu.dot_dimension_numbers<[2], [1], [1], [2], [0, 0, 0, 1, 1, 2], [0], [0]>} : vector<4x16x16xf32>, vector<4x16x32xf32>, vector<4x16x32xf32> -> vector<4x16x32xf32>
    %24 = vector.broadcast %22 : vector<4x16x1xf32> to vector<4x16x32xf32>
    %25 = arith.mulf %23, %24 : vector<4x16x32xf32>
    %c0_16 = arith.constant 0 : index
    %c0_17 = arith.constant 0 : index
    %c0_18 = arith.constant 0 : index
    %26 = vector.load %arg5[%c0_16, %c0_17, %c0_18] : memref<4x16x32xf32, #tpu.memory_space<vmem>>, vector<4x16x32xf32>
    tpu.vector_store %arg5[%c0_16, %c0_17, %c0_18], %25 {strides = array<i32>} : memref<4x16x32xf32, #tpu.memory_space<vmem>>, vector<4x16x32xf32>,
    return
  }
  func.func @transform_0(%arg0: i32) -> (i32, i32, i32) {
    %c0_i32 = arith.constant 0 : i32
    %c0_i32_0 = arith.constant 0 : i32
    %c0_i32_1 = arith.constant 0 : i32
    return %arg0, %c0_i32, %c0_i32_0 : i32, i32, i32
  }
  func.func @transform_1(%arg0: i32) -> (i32, i32, i32) {
    %c0_i32 = arith.constant 0 : i32
    %c0_i32_0 = arith.constant 0 : i32
    %c0_i32_1 = arith.constant 0 : i32
    return %arg0, %c0_i32, %c0_i32_0 : i32, i32, i32
  }
  func.func @transform_2(%arg0: i32) -> (i32, i32, i32) {
    %c0_i32 = arith.constant 0 : i32
    %c0_i32_0 = arith.constant 0 : i32
    %c0_i32_1 = arith.constant 0 : i32
    return %arg0, %c0_i32, %c0_i32_0 : i32, i32, i32
  }
  func.func @transform_3(%arg0: i32) -> (i32, i32, i32) {
    %c0_i32 = arith.constant 0 : i32
    %c0_i32_0 = arith.constant 0 : i32
    %c0_i32_1 = arith.constant 0 : i32
    %c0_i32_2 = arith.constant 0 : i32
    return %c0_i32, %c0_i32_0, %c0_i32_1 : i32, i32, i32
  }
  func.func @transform_4(%arg0: i32) -> (i32, i32, i32) {
    %c0_i32 = arith.constant 0 : i32
    %c0_i32_0 = arith.constant 0 : i32
    %c0_i32_1 = arith.constant 0 : i32
    return %arg0, %c0_i32, %c0_i32_0 : i32, i32, i32
  }
}

</mosaic_0001>

<bundles_post_ra>
// kernel: tpu_custom_call.1
= control target key start
LH: loop header
LB: loop body
LE: loop exit
PB: predicated region body
PF: predicated region fallthrough
CT: control target
= control target key end

     0   :  { %s1587_s0 = inlined_call_operand.hbm [shape: f32[8,16,32], index: 0, kind: input, shape index: {}]   ;;  %s1588_s1 = inlined_call_operand.hbm [shape: f32[8,16,32], index: 1, kind: input, shape index: {}]   ;;  %s1589_s2 = inlined_call_operand.hbm [shape: f32[8,16,32], index: 2, kind: input, shape index: {}]   ;;  %s1590_s3 = inlined_call_operand.hbm [shape: f32[4,16,16], index: 3, kind: input, shape index: {}]   ;;  %s1591_s4 = inlined_call_operand.hbm [shape: f32[8,16,32], index: 4, kind: output, shape index: {}]  }
   0x1   :  { %1595 = sst [smem:[#allocation17_spill]] %s1588_s1 }
   0x2   :  { %1596 = sst [smem:[#allocation18_spill]] %s1590_s3 }
   0x3   :  { %9 = vsyncpa [#allocation3], 0 }
   0x4   :  { %11 = vsyncpa [#allocation3 + $0x1], 0 }
   0x5   :  { %12 = vsyncpa [#allocation6], 0 }
   0x6   :  { %14 = vsyncpa [#allocation6 + $0x1], 0 }
   0x7   :  { %15 = vsyncpa [#allocation9], 0 }
   0x8   :  { %16 = vsyncpa [#allocation4], 0 }
   0x9   :  { %18 = vsyncpa [#allocation4 + $0x1], 0  ;;  %s1281_s15 = smov 0   ;;  %s1283_s16 = smov 0  }
   0xa   :  { %s1285_s17 = smov 0   ;;  %s1287_s18 = smov 0  }
   0xb LB: > { %s1302_s19 = sadd.s32 1, %s1249_s18   ;;  %s31_s20 = sadd.s32 1, %s1245_s17  ;;  %s1249_s18 = sphi %s1287_s18, %s1608_s18   ;;  %s1245_s17 = sphi %s1285_s17, %s1612_s17   ;;  %s1241_s16 = sphi %s1283_s16, %s1611_s16   ;;  %s1237_s15 = sphi %s1281_s15, %s1610_s15  }
   0xc   : > { %1597 = sst [smem:[#allocation15_spill]] %s1302_s19  ;;  %s28_s21 = ssub.s32 %s1249_s18, %s1302_s19 }
   0xd   : > { %p38_p0 = scmp.ne.s32.totalorder %s1245_s17, %s1241_s16  ;;  %p29_p1 = scmp.eq.s32.totalorder %s28_s21, 0 }
   0xe   : > { %p39_p2 = scmp.eq.s32.totalorder %s1249_s18, 0  ;;  %p983_p5 = scmp.lt.s32.totalorder %s1249_s18, 2 }
   0xf   : > { %s1311_s22 = scalar_select %p29_p1, %s1245_s17, %s31_s20  }
  0x10   : > { %p40_p3 = por %p39_p2, %p38_p0  ;;  %s1592_s23 = sand.u32 1, %s1245_s17  }
  0x11   : > { %1598 = sst [smem:[#allocation16_spill]] %s1311_s22  ;;  %s1321_s24 = sshll.u32 %s1592_s23, 6 }
  0x12   : > { %s1324_s25 = sshll.u32 %s1249_s18, 6  ;;  %p1326_p6 = pnand %p983_p5, %p40_p3 }
  0x13   : > { %s204_s27 = sand.u32 1, %s1249_s18   ;;  %s1600_s1 = sld [smem:[#allocation17_spill]] }
  0x14   : > { %s208_s6 = scalar_lea.vmem [#allocation5], %s1321_s24  ;;  %s1336_s8 = scalar_lea.sflag [#allocation6], %s204_s27 }
  0x15   : > { %s217_s7 = sshll.u32 %s208_s6, 4  ;;  %p1059_p8 = pneg %p1326_p6  ;;  %s218_s7 = int_to_ptr.vmem [resolvable:$true] %s217_s7 }
  0x19   : > { %s214_s30 = scalar_lea.hbm %s1600_s1, %s1324_s25  ;;  %s1062_s13 = scalar_lea.hbm %s1600_s1, 128 }
  0x1a   : > { %s215_s5 = sshll.u32 %s214_s30, 4  ;;  %s216_s5 = int_to_ptr.hbm [resolvable:$true] %s215_s5 }
  0x1b   : > { %s1055_s9 = sshra.s32 %s216_s5, 4  ;;  %s1056_s9 = int_to_ptr.hbm [resolvable:$true] %s1055_s9 }
  0x1c   : > { %s1057_s10 = scalar_lea.hbm %s1056_s9, 64  ;;  %p1063_p11 = scmp.lt.s32.totalorder %s1056_s9, %s1600_s1 }
  0x1d   : > { %p1058_p7 = scmp.ne.s32.totalorder %s1056_s9, %s1057_s10  ;;  %p1064_p12 = scmp.lt.s32.totalorder %s1062_s13, %s1057_s10 }
  0x1f   : > { %p1060_p9 = pnand %p1059_p8, %p1058_p7  ;;  %p1065_p13 = por %p1064_p12, %p1063_p11 }
  0x21   : > { %p1061_p10 = pneg %p1060_p9 }
  0x23   : > { %p1066_p1 = pnand %p1065_p13, %p1061_p10 }
  0x25   : > { %1069 = shalt.err (!%p1066_p1)
}
  0x26   : > { %s1251_s21 = smov 128   ;;  %s1252_s27 = smov 8  }
  0x27   : > { %974 = dma.hbm_to_vmem [thread:$0]  (!%p1326_p6), %s216_s5, 1024, %s218_s7, %s1336_s8, %s1251_s21, %s1251_s21, %s1252_s27  }
  0x28   : > { %s1356_s28 = sadd.s32 4294967295, %s1249_s18   ;;  %s892_s29 = sadd.s32 4294967294, %s1249_s18  }
  0x29   : > { %p44_p2 = scmp.ne.s32.totalorder %s1241_s16, %s1237_s15  ;;  %p45_p3 = scmp.eq.s32.totalorder %s1356_s28, 0 }
  0x2a   : > { %p141_p5 = scmp.eq.s32.totalorder %s1356_s28, 1  ;;  %p147_p7 = scmp.eq.s32.totalorder %s892_s29, 1 }
  0x2b   : > { %p1365_p9 = por %p45_p3, %p44_p2  ;;  %p893_p10 = scmp.ge.s32.totalorder %s1249_s18, 1 }
  0x2c   : > { %p1373_p11 = por %p141_p5, %p38_p0  ;;  %p1377_p12 = por %p147_p7, %p44_p2 }
  0x2d   : > { %p154_p13 = scmp.lt.s32.totalorder %s1249_s18, 3  ;;  %s1604_s3 = sld [smem:[#allocation18_spill]] }
  0x2e   : > { %s1253_s12 = smov [#allocation8]   ;;  %s191_s29 = scalar_lea.hbm %s1587_s0, %s1324_s25 }
  0x2f   : > { %p1385_p1 = pnand %p893_p10, %p154_p13  ;;  %s167_s13 = sshll.u32 %s1253_s12, 4  ;;  %s168_s13 = int_to_ptr.vmem [resolvable:$true] %s167_s13 }
  0x30   : > { %s192_s7 = sshll.u32 %s191_s29, 4  ;;  %s185_s9 = scalar_lea.vmem [#allocation2], %s1321_s24  ;;  %s193_s7 = int_to_ptr.hbm [resolvable:$true] %s192_s7 }
  0x31   : > { %p964_p0 = pneg %p1385_p1  ;;  %s194_s23 = sshll.u32 %s185_s9, 4  ;;  %s195_s23 = int_to_ptr.vmem [resolvable:$true] %s194_s23 }
  0x32   : > { %s1606_s12 = sand.u32 1, %s1245_s17   ;;  %s1122_s29 = scalar_lea.hbm %s1587_s0, 128 }
  0x33   : > { %s165_s10 = sshll.u32 %s1604_s3, 4  ;;  %p965_p2 = pnand %p964_p0, %p45_p3  ;;  %s166_s10 = int_to_ptr.hbm [resolvable:$true] %s165_s10 }
  0x34   : > { %s182_s1 = scalar_lea.sflag [#allocation3], %s1606_s12  ;;  %s1115_s3 = sshra.s32 %s193_s7, 4  ;;  %s1116_s3 = int_to_ptr.hbm [resolvable:$true] %s1115_s3 }
  0x35   : > { %967 = dma.hbm_to_vmem [thread:$0]  (!%p965_p2), %s166_s10, 1024, %s168_s13, [#allocation9], %s1251_s21, %s1251_s21, %s1252_s27  }
  0x36   : > { %s1117_s22 = scalar_lea.hbm %s1116_s3, 64  ;;  %p1123_p13 = scmp.lt.s32.totalorder %s1116_s3, %s1587_s0 }
  0x37   : > { %p1118_p5 = scmp.ne.s32.totalorder %s1116_s3, %s1117_s22  ;;  %p1124_p0 = scmp.lt.s32.totalorder %s1122_s29, %s1117_s22 }
  0x39   : > { %p1120_p7 = pnand %p1118_p5, %p1059_p8  ;;  %p1125_p2 = por %p1124_p0, %p1123_p13 }
  0x3b   : > { %p1121_p10 = pneg %p1120_p7 }
  0x3d   : > { %p1126_p4 = pnand %p1125_p2, %p1121_p10 }
  0x3f   : > { %1129 = shalt.err (!%p1126_p4)
}
  0x40   : > { %971 = dma.hbm_to_vmem [thread:$0]  (!%p1326_p6), %s193_s7, 1024, %s195_s23, %s182_s1, %s1251_s21, %s1251_s21, %s1252_s27  }
  0x41   : > { %s237_s12 = scalar_lea.hbm %s1589_s2, %s1324_s25  ;;  %s231_s19 = scalar_lea.vmem [#allocation7], %s1321_s24 }
  0x42   : > { %s238_s14 = sshll.u32 %s237_s12, 4  ;;  %s240_s3 = sshll.u32 %s231_s19, 4  ;;  %s239_s14 = int_to_ptr.hbm [resolvable:$true] %s238_s14  ;;  %s241_s3 = int_to_ptr.vmem [resolvable:$true] %s240_s3 }
  0x43   : > { %s1145_s22 = sshra.s32 %s239_s14, 4  ;;  %s1152_s1 = scalar_lea.hbm %s1589_s2, 128  ;;  %s1146_s22 = int_to_ptr.hbm [resolvable:$true] %s1145_s22 }
  0x44   : > { %s1147_s20 = scalar_lea.hbm %s1146_s22, 64  ;;  %p1153_p10 = scmp.lt.s32.totalorder %s1146_s22, %s1589_s2 }
  0x45   : > { %p1148_p4 = scmp.ne.s32.totalorder %s1146_s22, %s1147_s20  ;;  %p1154_p13 = scmp.lt.s32.totalorder %s1152_s1, %s1147_s20 }
  0x47   : > { %p1150_p5 = pnand %p1148_p4, %p1059_p8  ;;  %p1155_p0 = por %p1154_p13, %p1153_p10 }
  0x49   : > { %p1151_p7 = pneg %p1150_p5 }
  0x4b   : > { %p1156_p2 = pnand %p1155_p0, %p1151_p7 }
  0x4d   : > { %1159 = shalt.err (!%p1156_p2)
}
  0x4e   : > { %977 = dma.hbm_to_vmem [thread:$0]  (!%p1326_p6), %s239_s14, 1024, %s241_s3, %s1336_s8, %s1251_s21, %s1251_s21, %s1252_s27  }
  0x4f   : > { %252 = sbr.rel (%p1385_p1) target bundleno = 522 (0x20a), region = 36  ;;  %s1440_s24 = sand.u32 (!%p1385_p1), 1, %s1241_s16  }
  0x50   : > { %s1443_s25 = sshll.u32 (!%p1385_p1), %s1440_s24, 6  ;;  %s255_s10 = scalar_lea.sflag (!%p1385_p1), [#allocation3], %s1440_s24 }
  0x51   : > { %s1447_s13 = scalar_lea.vmem (!%p1385_p1), [#allocation2], %s1443_s25 }
  0x54   : > { %1220 = dma.done.wait (%p1365_p9), %s255_s10, 1024  }
  0x55   : > { %1222 = vsyncadd (%p1365_p9), %s255_s10, 4294966272  ;;  %s264_s26 = sand.u32 1, %s1356_s28   ;;  %s268_s21 = scalar_lea.vmem [#allocation5], %s1443_s25 }
  0x56   : > { %s265_s8 = scalar_lea.sflag [#allocation6], %s264_s26 }
  0x57   : > { %1224 = dma.done.wait (%p1365_p9), %s265_s8, 2048  }
  0x58   : > { %1226 = vsyncadd (%p1365_p9), %s265_s8, 4294965248  ;;  %s1460_s27 = scalar_lea.vmem [#allocation7], %s1443_s25 }
  0x59   : > { %1228 = dma.done.wait (%p45_p3), [#allocation9], 1024  }
  0x5a   : > { %1230 = vsyncadd (%p45_p3), [#allocation9], 4294966272  ;;  %vm355_vm0 = vcmask 261120   ;;  %v340_v0 = vld [vmem:[%s268_s21 + $0x8] sm:$0xff]  ;;  %v339_v2 = vld [vmem:[%s268_s21] sm:$0xff]  ;;  %vm512_vm1 = vcmask 130048  }
  0x5b   : > { %v344_v1 = vld [vmem:[%s268_s21 + $0x28] sm:$0xff]  ;;  %914 = vmatpush.xpose.msk.msra.mxu0 %vm355_vm0, %v340_v0  ;;  %v323_v3 = vld [vmem:[%s1447_s13] sm:$0xff]  ;;  %v342_v6 = vld [vmem:[%s268_s21 + $0x18] sm:$0xff]  ;;  %s1535_s30 = scalar_lea.vmem [#allocation10], %s1443_s25  ;;  %s951_s11 = sshll.u32 %s1356_s28, 6 }
  0x5c   : > { %922 = vmatpush.xpose.msk.msra.mxu2 %vm355_vm0, %v344_v1  ;;  %v327_v4 = vld [vmem:[%s1447_s13 + $0x20] sm:$0xff]  ;;  %v346_v7 = vld [vmem:[%s268_s21 + $0x38] sm:$0xff]  ;;  %v331_v8 = vmul.f32 0.17677669, %v323_v3  ;;  %918 = vmatpush.xpose.msk.msra.mxu1 %vm355_vm0, %v342_v6  ;;  %v325_v9 = vld [vmem:[%s1447_s13 + $0x10] sm:$0xff]  ;;  %s762_s19 = scalar_lea.hbm %s1591_s4, %s951_s11  ;;  %s763_s3 = sshll.u32 %s1535_s30, 4  ;;  %s764_s3 = int_to_ptr.vmem [resolvable:$true] %s763_s3 }
  0x5d   : > { %v343_v5 = vld [vmem:[%s268_s21 + $0x20] sm:$0xff]  ;;  %926 = vmatpush.xpose.msk.msra.mxu3 %vm355_vm0, %v346_v7  ;;  %v335_v10 = vmul.f32 0.17677669, %v327_v4  ;;  %v341_v11 = vld [vmem:[%s268_s21 + $0x10] sm:$0xff]  ;;  %v333_v14 = vmul.f32 0.17677669, %v325_v9 }
  0x5e   : > { %v345_v12 = vld [vmem:[%s268_s21 + $0x30] sm:$0xff]  ;;  %v328_v16 = vld [vmem:[%s1447_s13 + $0x28] sm:$0xff]  ;;  %v326_v18 = vld [vmem:[%s1447_s13 + $0x18] sm:$0xff]  ;;  %s765_s28 = sshll.u32 %s762_s19, 4  ;;  %s750_s22 = scalar_lea.sflag [#allocation4], %s1440_s24  ;;  %s766_s28 = int_to_ptr.hbm [resolvable:$true] %s765_s28 }
  0x5f   : > { %v329_v13 = vld [vmem:[%s1447_s13 + $0x30] sm:$0xff]  ;;  %915 = vmatpush.xpose.msk.msra.mxu0 %vm355_vm0, %v339_v2  ;;  %v324_v17 = vld [vmem:[%s1447_s13 + $0x8] sm:$0xff]  ;;  %v330_v19 = vld [vmem:[%s1447_s13 + $0x38] sm:$0xff]  ;;  %v336_v20 = vmul.f32 0.17677669, %v328_v16  ;;  %s1189_s20 = sshra.s32 %s766_s28, 4  ;;  %s1190_s20 = int_to_ptr.hbm [resolvable:$true] %s1189_s20 }
  0x60   : > { %923 = vmatpush.xpose.msk.msra.mxu2 %vm355_vm0, %v343_v5  ;;  %v337_v15 = vmul.f32 0.17677669, %v329_v13  ;;  %919 = vmatpush.xpose.msk.msra.mxu1 %vm355_vm0, %v341_v11  ;;  %v332_v21 = vmul.f32 0.17677669, %v324_v17  ;;  %v334_v22 = vmul.f32 0.17677669, %v326_v18  ;;  %p1196_p9 = scmp.lt.s32.totalorder %s1190_s20, %s1591_s4 }
  0x61   : > { %927 = vmatpush.xpose.msk.msra.mxu3 %vm355_vm0, %v345_v12  ;;  %v338_v23 = vmul.f32 0.17677669, %v330_v19  ;;  %v496_v24 = vld [vmem:[#allocation8] sm:$0xff]  ;;  %v498_v28 = vld [vmem:[#allocation8 + $0x10] sm:$0xff]  ;;  %v499_v39 = vld [vmem:[#allocation8 + $0x18] sm:$0xff]  ;;  %s1191_s29 = scalar_lea.hbm %s1190_s20, 64 }
  0x62   : > { %916 = vmatmul.msk.f32.vlgmr.msra.gmra.mxu0 %vm355_vm0, %v331_v8  ;;  %v500_v30 = vld [vmem:[#allocation8 + $0x20] sm:$0xff]  ;;  %v502_v35 = vld [vmem:[#allocation8 + $0x30] sm:$0xff]  ;;  %v501_v41 = vld [vmem:[#allocation8 + $0x28] sm:$0xff]  ;;  %p1192_p6 = scmp.ne.s32.totalorder %s1190_s20, %s1191_s29  ;;  %s1195_s23 = scalar_lea.hbm %s1591_s4, 128 }
  0x63   : > { %924 = vmatmul.msk.f32.vlgmr.msra.gmra.mxu2 %vm355_vm0, %v335_v10  ;;  %920 = vmatmul.msk.f32.vlgmr.msra.gmra.mxu1 %vm355_vm0, %v333_v14  ;;  %v497_v47 = vld [vmem:[#allocation8 + $0x8] sm:$0xff]  ;;  %v503_v49 = vld [vmem:[#allocation8 + $0x38] sm:$0xff]  ;;  %v347_v57 = vld [vmem:[%s1460_s27] sm:$0xff]  ;;  %p1197_p1 = scmp.lt.s32.totalorder %s1195_s23, %s1191_s29 }
  0x64   : > { %928 = vmatmul.msk.f32.vlgmr.msra.gmra.mxu3 %vm355_vm0, %v337_v15  ;;  %v348_v56 = vld [vmem:[%s1460_s27 + $0x8] sm:$0xff]  ;;  %v350_v59 = vld [vmem:[%s1460_s27 + $0x18] sm:$0xff]  ;;  %v351_v60 = vld [vmem:[%s1460_s27 + $0x20] sm:$0xff]  ;;  %p1193_p8 = pnand %p1192_p6, %p1373_p11 }
  0x65   : > { %637 = vmatpush.msrb.mxu0 %v348_v56  ;;  %v352_v58 = vld [vmem:[%s1460_s27 + $0x28] sm:$0xff]  ;;  %666 = vmatpush.msrb.mxu1 %v350_v59  ;;  %v349_v61 = vld [vmem:[%s1460_s27 + $0x10] sm:$0xff]  ;;  %v354_v62 = vld [vmem:[%s1460_s27 + $0x38] sm:$0xff]  ;;  %p1198_p4 = por %p1197_p1, %p1196_p9 }
  0x66   : > { %695 = vmatpush.msrb.mxu2 %v352_v58  ;;  %724 = vmatpush.msrb.mxu3 %v354_v62  ;;  %v353_v63 = vld [vmem:[%s1460_s27 + $0x30] sm:$0xff]  ;;  %p1194_p3 = pneg %p1193_p8 }
  0x67   : > { %638 = vmatpush.msrb.mxu0 %v347_v57  ;;  %667 = vmatpush.msrb.mxu1 %v349_v61 }
  0x68   : > { %696 = vmatpush.msrb.mxu2 %v351_v60  ;;  %725 = vmatpush.msrb.mxu3 %v353_v63  ;;  %p1199_p5 = pnand %p1198_p4, %p1194_p3 }
  0x6a   : > { %917 = vmatmul.msk.f32.gmra.mxu0 %vm355_vm0, %v332_v21 }
  0x6b   : > { %925 = vmatmul.msk.f32.gmra.mxu2 %vm355_vm0, %v336_v20  ;;  %921 = vmatmul.msk.f32.gmra.mxu1 %vm355_vm0, %v334_v22 }
  0x6c   : > { %929 = vmatmul.msk.f32.gmra.mxu3 %vm355_vm0, %v338_v23 }
  0xdf   : > { %v385_v25 = vpop.f32.mrf.mxu0 }
  0xe0   : > { %v504_v26 = vadd.f32 %v496_v24, %v385_v25  ;;  %v420_v27 = vpop.f32.mrf.mxu1 }
  0xe1   : > { %v506_v31 = vadd.f32 %v498_v28, %v420_v27 }
  0xe2   : > { %v513_v29 = vsel %vm512_vm1, %v504_v26, -inf }
  0xe3   : > { %514 = vmax.xlane.f32.xlu1 %v513_v29  ;;  %v519_v37 = vsel %vm512_vm1, %v506_v31, -inf }
  0xe6   : > { %v455_v32 = vpop.f32.mrf.mxu2 }
  0xe7   : > { %v508_v33 = vadd.f32 %v500_v30, %v455_v32  ;;  %v490_v34 = vpop.f32.mrf.mxu3  ;;  %v388_v46 = vpop.f32.mrf.mxu0 }
  0xe8   : > { %v423_v38 = vpop.f32.mrf.mxu1  ;;  %v510_v40 = vadd.f32 %v502_v35, %v490_v34  ;;  %v1499_v52 = vadd.f32 %v497_v47, %v388_v46 }
  0xe9   : > { %v525_v36 = vsel %vm512_vm1, %v508_v33, -inf  ;;  %v1493_v42 = vadd.f32 %v499_v39, %v423_v38 }
  0xea   : > { %526 = vmax.xlane.f32.xlu0 %v525_v36  ;;  %v531_v45 = vsel %vm512_vm1, %v510_v40, -inf  ;;  %v516_v55 = vsel %vm512_vm1, %v1499_v52, -inf }
  0xeb   : > { %520 = vmax.xlane.f32.xlu1 %v519_v37  ;;  %v522_v51 = vsel %vm512_vm1, %v1493_v42, -inf }
  0xee   : > { %v458_v43 = vpop.f32.mrf.mxu2 }
  0xef   : > { %v509_v44 = vadd.f32 %v501_v41, %v458_v43  ;;  %v493_v48 = vpop.f32.mrf.mxu3 }
  0xf0   : > { %v1501_v53 = vadd.f32 %v503_v49, %v493_v48 }
  0xf1   : > { %v528_v50 = vsel %vm512_vm1, %v509_v44, -inf }
  0xf2   : > { %532 = vmax.xlane.f32.xlu0 %v531_v45  ;;  %529 = vmax.xlane.f32.xlu2 %v528_v50  ;;  %v534_v54 = vsel %vm512_vm1, %v1501_v53, -inf }
  0xf3   : > { %523 = vmax.xlane.f32.xlu1 %v522_v51 }
  0xfa   : > { %535 = vmax.xlane.f32.xlu2 %v534_v54  ;;  %517 = vmax.xlane.f32.xlu0 %v516_v55 }
 0x156   : > { %v515_v0 = vpop.xlane.xlu1 %514 }
 0x157   : > { %v537_v1 = vsub.f32 %v504_v26, %v515_v0 }
 0x159   : > { %v545_v2 = vmul.f32 1.442695, %v537_v1 }
 0x15b   : > { %1023 = vpow2.f32 %v545_v2 }
 0x15d   : > { %v527_v3 = vpop.xlane.xlu0 %526 }
 0x15e   : > { %v541_v4 = vsub.f32 %v508_v33, %v527_v3  ;;  %v521_v5 = vpop.xlane.xlu1 %520 }
 0x15f   : > { %v539_v7 = vsub.f32 %v506_v31, %v521_v5 }
 0x160   : > { %v553_v6 = vmul.f32 1.442695, %v541_v4 }
 0x161   : > { %v1024_v8 = vpop.eup %1023  ;;  %v549_v9 = vmul.f32 1.442695, %v539_v7 }
 0x162   : > { %1025 = vpow2.f32 %v553_v6  ;;  %930 = vmatmul.msk.f32.vlgmr.msrb.gmra.mxu0 %vm512_vm1, %v1024_v8  ;;  %v561_v10 = vsel %vm512_vm1, %v1024_v8, 0.0 }
 0x163   : > { %1027 = vpow2.f32 %v549_v9  ;;  %562 = vadd.xlane.f32.xlu2 %v561_v10 }
 0x165   : > { %v533_v11 = vpop.xlane.xlu0 %532  ;;  %v530_v12 = vpop.xlane.xlu2 %529 }
 0x166   : > { %v543_v13 = vsub.f32 %v510_v40, %v533_v11  ;;  %v542_v14 = vsub.f32 %v509_v44, %v530_v12  ;;  %v524_v15 = vpop.xlane.xlu1 %523 }
 0x167   : > { %v540_v19 = vsub.f32 %v1493_v42, %v524_v15 }
 0x168   : > { %v1026_v16 = vpop.eup %1025  ;;  %v557_v17 = vmul.f32 1.442695, %v543_v13  ;;  %v555_v18 = vmul.f32 1.442695, %v542_v14 }
 0x169   : > { %934 = vmatmul.msk.f32.vlgmr.msrb.gmra.mxu2 %vm512_vm1, %v1026_v16  ;;  %v573_v20 = vsel %vm512_vm1, %v1026_v16, 0.0  ;;  %v1028_v21 = vpop.eup %1027  ;;  %v551_v22 = vmul.f32 1.442695, %v540_v19 }
 0x16a   : > { %1029 = vpow2.f32 %v557_v17  ;;  %574 = vadd.xlane.f32.xlu0 %v573_v20  ;;  %932 = vmatmul.msk.f32.vlgmr.msrb.gmra.mxu1 %vm512_vm1, %v1028_v21  ;;  %v567_v23 = vsel %vm512_vm1, %v1028_v21, 0.0 }
 0x16b   : > { %1031 = vpow2.f32 %v555_v18  ;;  %568 = vadd.xlane.f32.xlu1 %v567_v23 }
 0x16c   : > { %1033 = vpow2.f32 %v551_v22 }
 0x16d   : > { %v536_v24 = vpop.xlane.xlu2 %535  ;;  %v518_v25 = vpop.xlane.xlu0 %517 }
 0x16e   : > { %v544_v26 = vsub.f32 %v1501_v53, %v536_v24  ;;  %v538_v27 = vsub.f32 %v1499_v52, %v518_v25 }
 0x170   : > { %v1030_v28 = vpop.eup %1029  ;;  %v559_v29 = vmul.f32 1.442695, %v544_v26  ;;  %v547_v30 = vmul.f32 1.442695, %v538_v27 }
 0x171   : > { %v1032_v31 = vpop.eup %1031  ;;  %936 = vmatmul.msk.f32.vlgmr.msrb.gmra.mxu3 %vm512_vm1, %v1030_v28  ;;  %v579_v38 = vsel %vm512_vm1, %v1030_v28, 0.0 }
 0x172   : > { %v1034_v32 = vpop.eup %1033  ;;  %1035 = vpow2.f32 %v559_v29  ;;  %935 = vmatmul.msk.f32.gmra.mxu2 %vm512_vm1, %v1032_v31  ;;  %v576_v33 = vsel %vm512_vm1, %v1032_v31, 0.0 }
 0x173   : > { %1037 = vpow2.f32 %v547_v30  ;;  %933 = vmatmul.msk.f32.gmra.mxu1 %vm512_vm1, %v1034_v32  ;;  %v570_v34 = vsel %vm512_vm1, %v1034_v32, 0.0  ;;  %577 = vadd.xlane.f32.xlu1 %v576_v33 }
 0x174   : > { %571 = vadd.xlane.f32.xlu2 %v570_v34 }
 0x178   : > { %v1036_v35 = vpop.eup %1035 }
 0x179   : > { %v1038_v36 = vpop.eup %1037  ;;  %937 = vmatmul.msk.f32.gmra.mxu3 %vm512_vm1, %v1036_v35  ;;  %v582_v39 = vsel %vm512_vm1, %v1036_v35, 0.0 }
 0x17a   : > { %931 = vmatmul.msk.f32.gmra.mxu0 %vm512_vm1, %v1038_v36  ;;  %v564_v37 = vsel %vm512_vm1, %v1038_v36, 0.0 }
 0x17b   : > { %565 = vadd.xlane.f32.xlu0 %v564_v37 }
 0x17c   : > { %580 = vadd.xlane.f32.xlu2 %v579_v38 }
 0x183   : > { %583 = vadd.xlane.f32.xlu0 %v582_v39 }
 0x1d6   : > { %v563_v40 = vpop.xlane.xlu2 %562 }
 0x1d7   : > { %1039 = vrcp.f32 %v563_v40 }
 0x1dd   : > { %v575_v41 = vpop.xlane.xlu0 %574  ;;  %v1040_v42 = vpop.eup %1039 }
 0x1de   : > { %1041 = vrcp.f32 %v575_v41  ;;  %v593_v43 = vmul.f32 %v1040_v42, %v563_v40  ;;  %v569_v44 = vpop.xlane.xlu1 %568 }
 0x1df   : > { %1043 = vrcp.f32 %v569_v44  ;;  %v640_v48 = vpop.f32.mrf.mxu0 }
 0x1e0   : > { %v601_v45 = vsub.f32 2.0, %v593_v43 }
 0x1e2   : > { %v609_v46 = vmul.f32 %v1040_v42, %v601_v45 }
 0x1e4   : > { %v1042_v47 = vpop.eup %1041  ;;  %v733_v50 = vmul.f32 %v640_v48, %v609_v46 }
 0x1e5   : > { %v597_v49 = vmul.f32 %v1042_v47, %v575_v41  ;;  %v1044_v51 = vpop.eup %1043 }
 0x1e6   : > { %v595_v53 = vmul.f32 %v1044_v51, %v569_v44  ;;  %741 = vst.msk [vmem:[%s1535_s30] sm:$0xff] %vm355_vm0, %v733_v50  ;;  %v578_v55 = vpop.xlane.xlu1 %577 }
 0x1e7   : > { %v605_v52 = vsub.f32 2.0, %v597_v49  ;;  %v572_v54 = vpop.xlane.xlu2 %571  ;;  %v669_v57 = vpop.f32.mrf.mxu1 }
 0x1e8   : > { %1045 = vrcp.f32 %v572_v54  ;;  %v603_v56 = vsub.f32 2.0, %v595_v53 }
 0x1e9   : > { %1047 = vrcp.f32 %v578_v55  ;;  %v613_v59 = vmul.f32 %v1042_v47, %v605_v52 }
 0x1ea   : > { %v611_v58 = vmul.f32 %v1044_v51, %v603_v56 }
 0x1ec   : > { %v698_v60 = vpop.f32.mrf.mxu2  ;;  %v735_v61 = vmul.f32 %v669_v57, %v611_v58 }
 0x1ed   : > { %v737_v62 = vmul.f32 %v698_v60, %v613_v59 }
 0x1ee   : > { %v1046_v63 = vpop.eup %1045  ;;  %v566_v0 = vpop.xlane.xlu0 %565  ;;  %743 = vst.msk [vmem:[%s1535_s30 + $0x10] sm:$0xff] %vm355_vm0, %v735_v61 }
 0x1ef   : > { %v1048_v1 = vpop.eup %1047  ;;  %v596_v2 = vmul.f32 %v1046_v63, %v572_v54  ;;  %1049 = vrcp.f32 %v566_v0  ;;  %v581_v3 = vpop.xlane.xlu2 %580  ;;  %745 = vst.msk [vmem:[%s1535_s30 + $0x20] sm:$0xff] %vm355_vm0, %v737_v62 }
 0x1f0   : > { %v598_v4 = vmul.f32 %v1048_v1, %v578_v55  ;;  %1051 = vrcp.f32 %v581_v3  ;;  %v672_v8 = vpop.f32.mrf.mxu1 }
 0x1f1   : > { %v604_v5 = vsub.f32 2.0, %v596_v2 }
 0x1f2   : > { %v606_v6 = vsub.f32 2.0, %v598_v4 }
 0x1f3   : > { %v612_v7 = vmul.f32 %v1046_v63, %v604_v5 }
 0x1f4   : > { %v614_v9 = vmul.f32 %v1048_v1, %v606_v6  ;;  %v727_v20 = vpop.f32.mrf.mxu3 }
 0x1f5   : > { %v1050_v10 = vpop.eup %1049  ;;  %v736_v11 = vmul.f32 %v672_v8, %v612_v7  ;;  %v701_v12 = vpop.f32.mrf.mxu2 }
 0x1f6   : > { %v1052_v13 = vpop.eup %1051  ;;  %v594_v14 = vmul.f32 %v1050_v10, %v566_v0  ;;  %v738_v15 = vmul.f32 %v701_v12, %v614_v9  ;;  %v584_v16 = vpop.xlane.xlu0 %583 }
 0x1f7   : > { %v599_v17 = vmul.f32 %v1052_v13, %v581_v3  ;;  %744 = vst.msk [vmem:[%s1535_s30 + $0x18] sm:$0xff] %vm355_vm0, %v736_v11  ;;  %1053 = vrcp.f32 %v584_v16  ;;  %v643_v23 = vpop.f32.mrf.mxu0 }
 0x1f8   : > { %v602_v18 = vsub.f32 2.0, %v594_v14  ;;  %746 = vst.msk [vmem:[%s1535_s30 + $0x28] sm:$0xff] %vm355_vm0, %v738_v15 }
 0x1f9   : > { %v607_v19 = vsub.f32 2.0, %v599_v17 }
 0x1fa   : > { %v610_v21 = vmul.f32 %v1050_v10, %v602_v18 }
 0x1fb   : > { %v615_v22 = vmul.f32 %v1052_v13, %v607_v19 }
 0x1fc   : > { %v734_v24 = vmul.f32 %v643_v23, %v610_v21  ;;  %v730_v30 = vpop.f32.mrf.mxu3 }
 0x1fd   : > { %v1054_v25 = vpop.eup %1053  ;;  %v739_v26 = vmul.f32 %v727_v20, %v615_v22 }
 0x1fe   : > { %v600_v27 = vmul.f32 %v1054_v25, %v584_v16  ;;  %742 = vst.msk [vmem:[%s1535_s30 + $0x8] sm:$0xff] %vm355_vm0, %v734_v24 }
 0x1ff   : > { %747 = vst.msk [vmem:[%s1535_s30 + $0x30] sm:$0xff] %vm355_vm0, %v739_v26 }
 0x200   : > { %v608_v28 = vsub.f32 2.0, %v600_v27 }
 0x202   : > { %v616_v29 = vmul.f32 %v1054_v25, %v608_v28 }
 0x204   : > { %v740_v31 = vmul.f32 %v730_v30, %v616_v29 }
 0x206   : > { %748 = vst.msk [vmem:[%s1535_s30 + $0x38] sm:$0xff] %vm355_vm0, %v740_v31 }
 0x207   : > { %1202 = shalt.err (!%p1199_p5)
}
 0x208   : > { %s1254_s24 = smov 128   ;;  %s1255_s10 = smov 8  }
 0x209   : > { %962 = dma.vmem_to_hbm [thread:$0]  (%p1373_p11), %s764_s3, 1024, %s766_s28, %s750_s22, %s1254_s24, %s1254_s24, %s1255_s10  }
 0x20a PF: > { %s780_s13 = sand.u32 1, %s1237_s15   ;;  %p1607_p7 = scmp.ge.s32.totalorder %s1249_s18, 2 }
 0x20b   : > { %s781_s26 = scalar_lea.sflag [#allocation4], %s780_s13 }
 0x20c   : > { %p979_p10 = pnand %p1607_p7, %p1377_p12 }
 0x20e   : > { %p980_p13 = pneg %p979_p10 }
 0x210   : > { %1232 = dma.done.wait (%p980_p13), %s781_s26, 1024  }
 0x211   : > { %1234 = vsyncadd (%p980_p13), %s781_s26, 4294966272  ;;  %s1608_s18 = sld [smem:[#allocation15_spill]]  ;;  %s1610_s15 = smov %s1241_s16 }
 0x212   : > { %s1609_s8 = sld [smem:[#allocation16_spill]]  ;;  %s1611_s16 = smov %s1245_s17 }
 0x217   : > { %p21_p0 = scmp.ge.s32.totalorder %s1608_s18, 4  }
 0x218   : > { %s1612_s17 = smov %s1609_s8 }
 0x219   :  { %23 = sbr.rel (!%p21_p0) target bundleno = 11 (0xb), region = 109 }
 0x21e   :  { %787 = vsyncpa [#allocation3], 1 }
 0x21f   :  { %789 = vsyncpa [#allocation3 + $0x1], 1 }
 0x220   :  { %790 = vsyncpa [#allocation6], 1 }
 0x221   :  { %792 = vsyncpa [#allocation6 + $0x1], 1 }
 0x222   :  { %793 = vsyncpa [#allocation9], 1 }
 0x223   :  { %794 = vsyncpa [#allocation4], 1 }
 0x224   :  { %796 = vsyncpa [#allocation4 + $0x1], 1 }

</bundles_post_ra>
